<compile_context>
chip_gen: v7x
topology: tpu7x:2x2x1
jax: 0.10.0
libtpu: 0.0.40
codegen_flags: <defaults>
</compile_context>

<pallas_src>
import jax
import jax.numpy as jnp
from jax.experimental import pallas as pl
from jax.experimental.pallas import tpu as pltpu

K = 3          # kernel_size
S = 3          # stride (PyTorch default: stride = kernel_size)
_LANE = 128    # TPU vreg lane width


def _out_size(n):
    # ceil_mode=True, padding=0:  ceil((n - K) / S) + 1
    return -(-(n - K) // S) + 1


def _full_windows(n):
    # number of pooling windows lying entirely inside [0, n)
    return (n - K) // S + 1


def _maxpool_kernel(x_ref, o_ref):
    """One (H, W, R) input block -> one (h_out, w_out, R) output block.

    Layout: pooled axes on the leading (H) / sublane (W) dims, a chunk R of
    the flattened batch*channel dim on the lane axis.  Row windows are K
    stride-S reads along the cheap leading axis; column windows are
    contiguous K-wide sublane slices; everything is combined with a VPU
    jnp.maximum tree (no MXU, native dtype) and written back with one
    full-block, lane-dense store.
    """
    H, W, _ = x_ref.shape
    h_out, w_out, _ = o_ref.shape
    h_full = _full_windows(H)          # row windows fully inside [0, H)

    # ---- row stage: K stride-S reads along the leading axis ---------------
    rowmax = x_ref[pl.ds(0, h_full, stride=S), :, :]
    for kh in range(1, K):
        rowmax = jnp.maximum(rowmax, x_ref[pl.ds(kh, h_full, stride=S), :, :])
    if h_out > h_full:                 # ceil_mode: ragged last row window
        r0 = S * (h_out - 1)           # r0 <= H-1 is guaranteed when stride == K
        tail = x_ref[r0:r0 + 1, :, :]
        for r in range(r0 + 1, H):
            tail = jnp.maximum(tail, x_ref[r:r + 1, :, :])
        rowmax = jnp.concatenate([rowmax, tail], axis=0)
    # rowmax: (h_out, W, R)

    # ---- column stage: contiguous K-wide sublane windows + VPU max tree ----
    cols = []
    for wo in range(w_out):
        c0 = wo * S
        m = rowmax[:, c0:c0 + 1, :]
        for k in range(1, min(K, W - c0)):   # ragged last window self-clamps
            m = jnp.maximum(m, rowmax[:, c0 + k:c0 + k + 1, :])
        cols.append(m)                       # (h_out, 1, R)
    o_ref[...] = jnp.concatenate(cols, axis=1).astype(o_ref.dtype)


def _pick_lane_chunk(NC, H, W, h_out, w_out, itemsize):
    """Images (N*C) per grid step on the lane axis, sized from PADDED bytes."""
    if NC <= _LANE:
        return NC
    sub = max(8, 32 // itemsize)             # sublane packing: f32 8, bf16 16
    rup = lambda a, b: -(-a // b) * b

    def working_set(r):
        rl = rup(r, _LANE)
        in_blk = H * rup(W, sub) * rl * itemsize              # padded input
        out_blk = h_out * rup(w_out, sub) * rl * itemsize     # padded output
        interm = 2 * h_out * rup(W, sub) * rl * itemsize      # rowmax + temps
        return 2 * in_blk + 2 * out_blk + interm              # x2 double buffer

    budget = 6 << 20        # well under v5e's 16 MiB scoped-VMEM default
    min_blk = 512 << 10     # keep blocks large enough to amortize ~0.35us/step

    r = _LANE
    while r + _LANE <= NC and working_set(r + _LANE) <= budget:
        r += _LANE
    # Prefer >= 8 grid steps (>= 4 per v7x TensorCore) when blocks stay large.
    while r > _LANE and pl.cdiv(NC, r) < 8 and working_set(r - _LANE) >= min_blk:
        r -= _LANE
    return r


@jax.jit
def maxpool2d_k3_ceil(x_nchw):
    """MaxPool2d(kernel_size=3, stride=3, ceil_mode=True) on an NCHW array."""
    N, C, H, W = x_nchw.shape
    assert H >= K and W >= K, "spatial dims must be >= kernel_size"
    h_out, w_out = _out_size(H), _out_size(W)
    NC = N * C

    # Lane-dense layout: (H, W, N*C).  Pure layout plumbing, done once by XLA.
    xt = jnp.transpose(x_nchw.reshape(NC, H, W), (1, 2, 0))

    R = _pick_lane_chunk(NC, H, W, h_out, w_out, xt.dtype.itemsize)
    grid = (pl.cdiv(NC, R),)

    out = pl.pallas_call(
        _maxpool_kernel,
        out_shape=jax.ShapeDtypeStruct((h_out, w_out, NC), xt.dtype),
        grid=grid,
        in_specs=[pl.BlockSpec((H, W, R), lambda g: (0, 0, g))],
        out_specs=pl.BlockSpec((h_out, w_out, R), lambda g: (0, 0, g)),
        compiler_params=pltpu.CompilerParams(
            dimension_semantics=("parallel",),
            vmem_limit_bytes=32 * 1024 * 1024,
        ),
    )(xt)

    return jnp.transpose(out, (2, 0, 1)).reshape(N, C, h_out, w_out)


def _reference(x_nchw):
    """Pure-JAX reference (torch.nn.MaxPool2d(3, ceil_mode=True) semantics)."""
    N, C, H, W = x_nchw.shape
    h_out, w_out = _out_size(H), _out_size(W)
    neg = jnp.finfo(x_nchw.dtype).min
    xp = jnp.pad(x_nchw,
                 ((0, 0), (0, 0), (0, h_out * S - H), (0, w_out * S - W)),
                 constant_values=neg)
    return xp.reshape(N, C, h_out, S, w_out, S).max(axis=(3, 5))


if __name__ == "__main__":
    key = jax.random.PRNGKey(0)
    x = jax.random.normal(key, (2, 4, 16, 16), dtype=jnp.float32)  # NCHW

    y = jax.block_until_ready(maxpool2d_k3_ceil(x))

    assert y.shape == (2, 4, 6, 6), y.shape            # ceil((16-3)/3)+1 = 6
    y_ref = _reference(x)
    assert jnp.allclose(y, y_ref), "Pallas maxpool mismatch vs reference"

    print("KERNEL_OK")
</pallas_src>

<mosaic_0001>
module attributes {stable_mosaic.version = 11 : i64} {
  func.func @_maxpool_kernel(%arg0: i32, %arg1: memref<16x16x8xf32, #tpu.memory_space<vmem>>, %arg2: memref<6x6x8xf32, #tpu.memory_space<vmem>>) attributes {dimension_semantics = [#tpu.dimension_semantics<parallel>], iteration_bounds = array<i64: 1>, scalar_prefetch = 0 : i64, scratch_operands = 0 : i64, tpu.core_type = #tpu.core_type<tc>, window_params = [{transform_indices = @transform_0, window_bounds = array<i64: 16, 16, 8>}, {transform_indices = @transform_1, window_bounds = array<i64: 6, 6, 8>}]} {
    %c0 = arith.constant 0 : index
    %c0_0 = arith.constant 0 : index
    %c0_1 = arith.constant 0 : index
    %0 = tpu.strided_load %arg1[%c0, %c0_0, %c0_1] {strides = array<i32: 3, 1, 1>} : memref<16x16x8xf32, #tpu.memory_space<vmem>>, vector<5x16x8xf32>
    %c1 = arith.constant 1 : index
    %c0_2 = arith.constant 0 : index
    %c0_3 = arith.constant 0 : index
    %1 = tpu.strided_load %arg1[%c1, %c0_2, %c0_3] {strides = array<i32: 3, 1, 1>} : memref<16x16x8xf32, #tpu.memory_space<vmem>>, vector<5x16x8xf32>
    %2 = arith.maximumf %0, %1 : vector<5x16x8xf32>
    %c2 = arith.constant 2 : index
    %c0_4 = arith.constant 0 : index
    %c0_5 = arith.constant 0 : index
    %3 = tpu.strided_load %arg1[%c2, %c0_4, %c0_5] {strides = array<i32: 3, 1, 1>} : memref<16x16x8xf32, #tpu.memory_space<vmem>>, vector<5x16x8xf32>
    %4 = arith.maximumf %2, %3 : vector<5x16x8xf32>
    %c15 = arith.constant 15 : index
    %c0_6 = arith.constant 0 : index
    %c0_7 = arith.constant 0 : index
    %5 = vector.load %arg1[%c15, %c0_6, %c0_7] : memref<16x16x8xf32, #tpu.memory_space<vmem>>, vector<1x16x8xf32>
    %6 = tpu.concatenate %4, %5 in 0 : vector<5x16x8xf32>, vector<1x16x8xf32> -> vector<6x16x8xf32>
    %7 = vector.extract_strided_slice %6 {offsets = [0, 0, 0], sizes = [6, 1, 8], strides = [1, 1, 1]} : vector<6x16x8xf32> to vector<6x1x8xf32>
    %8 = vector.extract_strided_slice %6 {offsets = [0, 1, 0], sizes = [6, 1, 8], strides = [1, 1, 1]} : vector<6x16x8xf32> to vector<6x1x8xf32>
    %9 = arith.maximumf %7, %8 : vector<6x1x8xf32>
    %10 = vector.extract_strided_slice %6 {offsets = [0, 2, 0], sizes = [6, 1, 8], strides = [1, 1, 1]} : vector<6x16x8xf32> to vector<6x1x8xf32>
    %11 = arith.maximumf %9, %10 : vector<6x1x8xf32>
    %12 = vector.extract_strided_slice %6 {offsets = [0, 3, 0], sizes = [6, 1, 8], strides = [1, 1, 1]} : vector<6x16x8xf32> to vector<6x1x8xf32>
    %13 = vector.extract_strided_slice %6 {offsets = [0, 4, 0], sizes = [6, 1, 8], strides = [1, 1, 1]} : vector<6x16x8xf32> to vector<6x1x8xf32>
    %14 = arith.maximumf %12, %13 : vector<6x1x8xf32>
    %15 = vector.extract_strided_slice %6 {offsets = [0, 5, 0], sizes = [6, 1, 8], strides = [1, 1, 1]} : vector<6x16x8xf32> to vector<6x1x8xf32>
    %16 = arith.maximumf %14, %15 : vector<6x1x8xf32>
    %17 = vector.extract_strided_slice %6 {offsets = [0, 6, 0], sizes = [6, 1, 8], strides = [1, 1, 1]} : vector<6x16x8xf32> to vector<6x1x8xf32>
    %18 = vector.extract_strided_slice %6 {offsets = [0, 7, 0], sizes = [6, 1, 8], strides = [1, 1, 1]} : vector<6x16x8xf32> to vector<6x1x8xf32>
    %19 = arith.maximumf %17, %18 : vector<6x1x8xf32>
    %20 = vector.extract_strided_slice %6 {offsets = [0, 8, 0], sizes = [6, 1, 8], strides = [1, 1, 1]} : vector<6x16x8xf32> to vector<6x1x8xf32>
    %21 = arith.maximumf %19, %20 : vector<6x1x8xf32>
    %22 = vector.extract_strided_slice %6 {offsets = [0, 9, 0], sizes = [6, 1, 8], strides = [1, 1, 1]} : vector<6x16x8xf32> to vector<6x1x8xf32>
    %23 = vector.extract_strided_slice %6 {offsets = [0, 10, 0], sizes = [6, 1, 8], strides = [1, 1, 1]} : vector<6x16x8xf32> to vector<6x1x8xf32>
    %24 = arith.maximumf %22, %23 : vector<6x1x8xf32>
    %25 = vector.extract_strided_slice %6 {offsets = [0, 11, 0], sizes = [6, 1, 8], strides = [1, 1, 1]} : vector<6x16x8xf32> to vector<6x1x8xf32>
    %26 = arith.maximumf %24, %25 : vector<6x1x8xf32>
    %27 = vector.extract_strided_slice %6 {offsets = [0, 12, 0], sizes = [6, 1, 8], strides = [1, 1, 1]} : vector<6x16x8xf32> to vector<6x1x8xf32>
    %28 = vector.extract_strided_slice %6 {offsets = [0, 13, 0], sizes = [6, 1, 8], strides = [1, 1, 1]} : vector<6x16x8xf32> to vector<6x1x8xf32>
    %29 = arith.maximumf %27, %28 : vector<6x1x8xf32>
    %30 = vector.extract_strided_slice %6 {offsets = [0, 14, 0], sizes = [6, 1, 8], strides = [1, 1, 1]} : vector<6x16x8xf32> to vector<6x1x8xf32>
    %31 = arith.maximumf %29, %30 : vector<6x1x8xf32>
    %32 = vector.extract_strided_slice %6 {offsets = [0, 15, 0], sizes = [6, 1, 8], strides = [1, 1, 1]} : vector<6x16x8xf32> to vector<6x1x8xf32>
    %33 = tpu.concatenate %11, %16, %21, %26, %31, %32 in 1 : vector<6x1x8xf32>, vector<6x1x8xf32>, vector<6x1x8xf32>, vector<6x1x8xf32>, vector<6x1x8xf32>, vector<6x1x8xf32> -> vector<6x6x8xf32>
    %c0_8 = arith.constant 0 : index
    %c0_9 = arith.constant 0 : index
    %c0_10 = arith.constant 0 : index
    %34 = vector.load %arg2[%c0_8, %c0_9, %c0_10] : memref<6x6x8xf32, #tpu.memory_space<vmem>>, vector<6x6x8xf32>
    tpu.vector_store %arg2[%c0_8, %c0_9, %c0_10], %33 {strides = array<i32>} : memref<6x6x8xf32, #tpu.memory_space<vmem>>, vector<6x6x8xf32>,
    return
  }
  func.func @transform_0(%arg0: i32) -> (i32, i32, i32) {
    %c0_i32 = arith.constant 0 : i32
    %c0_i32_0 = arith.constant 0 : i32
    %c0_i32_1 = arith.constant 0 : i32
    return %c0_i32, %c0_i32_0, %arg0 : i32, i32, i32
  }
  func.func @transform_1(%arg0: i32) -> (i32, i32, i32) {
    %c0_i32 = arith.constant 0 : i32
    %c0_i32_0 = arith.constant 0 : i32
    %c0_i32_1 = arith.constant 0 : i32
    return %c0_i32, %c0_i32_0, %arg0 : i32, i32, i32
  }
}

</mosaic_0001>

<bundles_post_ra>
// kernel: maxpool2d_k3_ceil.1
= control target key start
LH: loop header
LB: loop body
LE: loop exit
PB: predicated region body
PF: predicated region fallthrough
CT: control target
= control target key end

     0   :  { %vm207_vm0 = vcmask 1040384   ;;  %vm214_vm1 = vcmask 1041408   ;;  %vm221_vm2 = vcmask 1042432   ;;  %vm228_vm3 = vcmask 1043456   ;;  %s440_s0 = inlined_call_operand.vmem [shape: f32[16,16,8], index: 0, kind: input, shape index: {}]   ;;  %s441_s1 = inlined_call_operand.vmem [shape: f32[6,6,8], index: 1, kind: output, shape index: {}]  }
   0x1   :  { %v8_v0 = vld [vmem:[%s440_s0] sm:$0xff]  ;;  %v9_v1 = vld [vmem:[%s440_s0 + $0x8] sm:$0xff]  ;;  %v253_v2 = vld [vmem:[%s440_s0 + $0x10] sm:$0xff]  ;;  %vm235_vm4 = vcmask 1044480   ;;  %vm242_vm5 = vcmask 62464  }
   0x2   :  { %v254_v3 = vld [vmem:[%s440_s0 + $0x18] sm:$0xff]  ;;  %v29_v4 = vmax.f32 %v8_v0, %v253_v2  ;;  %v263_v5 = vld [vmem:[%s440_s0 + $0x20] sm:$0xff]  ;;  %v264_v6 = vld [vmem:[%s440_s0 + $0x28] sm:$0xff] }
   0x3   :  { %v30_v7 = vmax.f32 %v9_v1, %v254_v3  ;;  %v10_v8 = vld [vmem:[%s440_s0 + $0x30] sm:$0xff]  ;;  %v11_v9 = vld [vmem:[%s440_s0 + $0x38] sm:$0xff]  ;;  %v255_v10 = vld [vmem:[%s440_s0 + $0x40] sm:$0xff] }
   0x4   :  { %v50_v11 = vmax.f32 %v29_v4, %v263_v5  ;;  %v256_v12 = vld [vmem:[%s440_s0 + $0x48] sm:$0xff]  ;;  %v31_v13 = vmax.f32 %v10_v8, %v255_v10  ;;  %v265_v14 = vld [vmem:[%s440_s0 + $0x50] sm:$0xff]  ;;  %v266_v15 = vld [vmem:[%s440_s0 + $0x58] sm:$0xff] }
   0x5   :  { %v51_v16 = vmax.f32 %v30_v7, %v264_v6  ;;  %v32_v17 = vmax.f32 %v11_v9, %v256_v12  ;;  %v12_v18 = vld [vmem:[%s440_s0 + $0x60] sm:$0xff]  ;;  %v13_v19 = vld [vmem:[%s440_s0 + $0x68] sm:$0xff]  ;;  %v257_v20 = vld [vmem:[%s440_s0 + $0x70] sm:$0xff] }
   0x6   :  { %v69_v21 = vrot.slane %v50_v11, 1  ;;  %v87_v22 = vrot.slane %v50_v11, 2  ;;  %v52_v23 = vmax.f32 %v31_v13, %v265_v14  ;;  %v258_v24 = vld [vmem:[%s440_s0 + $0x78] sm:$0xff]  ;;  %v33_v25 = vmax.f32 %v12_v18, %v257_v20  ;;  %v267_v26 = vld [vmem:[%s440_s0 + $0x80] sm:$0xff]  ;;  %v268_v27 = vld [vmem:[%s440_s0 + $0x88] sm:$0xff] }
   0x7   :  { %v111_v28 = vrot.slane %v51_v16, 2  ;;  %v129_v29 = vrot.slane %v51_v16, 1  ;;  %v53_v30 = vmax.f32 %v32_v17, %v266_v15  ;;  %v34_v31 = vmax.f32 %v13_v19, %v258_v24  ;;  %v14_v48 = vld [vmem:[%s440_s0 + $0x90] sm:$0xff]  ;;  %v259_v49 = vld [vmem:[%s440_s0 + $0xa0] sm:$0xff]  ;;  %v15_v58 = vld [vmem:[%s440_s0 + $0x98] sm:$0xff] }
   0x8   :  { %v81_v32 = vmax.f32 %v50_v11, %v69_v21  ;;  %v70_v33 = vrot.slane %v52_v23, 1  ;;  %v88_v34 = vrot.slane %v52_v23, 2  ;;  %v54_v35 = vmax.f32 %v33_v25, %v267_v26  ;;  %v260_v59 = vld [vmem:[%s440_s0 + $0xa8] sm:$0xff]  ;;  %v269_v4 = vld [vmem:[%s440_s0 + $0xb0] sm:$0xff]  ;;  %v270_v9 = vld [vmem:[%s440_s0 + $0xb8] sm:$0xff] }
   0x9   :  { %v141_v36 = vmax.f32 %v51_v16, %v129_v29  ;;  %v112_v37 = vrot.slane %v53_v30, 2  ;;  %v130_v38 = vrot.slane %v53_v30, 1  ;;  %v55_v39 = vmax.f32 %v34_v31, %v268_v27  ;;  %v16_v10 = vld [vmem:[%s440_s0 + $0xc0] sm:$0xff]  ;;  %v261_v11 = vld [vmem:[%s440_s0 + $0xd0] sm:$0xff]  ;;  %v17_v20 = vld [vmem:[%s440_s0 + $0xc8] sm:$0xff] }
   0xa   :  { %v99_v40 = vmax.f32 %v81_v32, %v87_v22  ;;  %v123_v41 = vmax.f32 %v81_v32, %v111_v28  ;;  %v82_v42 = vmax.f32 %v52_v23, %v70_v33  ;;  %v71_v43 = vrot.slane %v54_v35, 1  ;;  %v262_v21 = vld [vmem:[%s440_s0 + $0xd8] sm:$0xff]  ;;  %v271_v26 = vld [vmem:[%s440_s0 + $0xe0] sm:$0xff]  ;;  %v273_v27 = vld [vmem:[%s440_s0 + $0xf0] sm:$0xff] }
   0xb   :  { %v147_v44 = vmax.f32 %v141_v36, %v111_v28  ;;  %v142_v45 = vmax.f32 %v53_v30, %v130_v38  ;;  %v89_v46 = vrot.slane %v54_v35, 2  ;;  %v339_v47 = vrot.slane %v55_v39, 2  ;;  %v272_v32 = vld [vmem:[%s440_s0 + $0xe8] sm:$0xff] }
   0xc   :  { %v159_v50 = vrot.slane %v99_v40, 2  ;;  %v177_v51 = vrot.slane %v123_v41, 4  ;;  %v100_v52 = vmax.f32 %v82_v42, %v88_v34  ;;  %v124_v53 = vmax.f32 %v82_v42, %v112_v37 }
   0xd   :  { %v195_v54 = vrot.slane %v147_v44, 6  ;;  %v148_v55 = vmax.f32 %v142_v45, %v112_v37  ;;  %v83_v56 = vmax.f32 %v54_v35, %v71_v43  ;;  %v131_v57 = vrot.slane %v55_v39, 1 }
   0xe   :  { %v208_v60 = vsel %vm207_vm0, %v99_v40, %v159_v50  ;;  %v160_v61 = vrot.slane %v100_v52, 2  ;;  %v178_v62 = vrot.slane %v124_v53, 4  ;;  %v35_v63 = vmax.f32 %v14_v48, %v259_v49  ;;  %v274_v50 = vld [vmem:[%s440_s0 + $0xf8] sm:$0xff] }
   0xf   :  { %v215_v0 = vsel %vm214_vm1, %v208_v60, %v177_v51  ;;  %v196_v1 = vrot.slane %v148_v55, 6  ;;  %v101_v2 = vmax.f32 %v83_v56, %v89_v46  ;;  %v125_v3 = vmax.f32 %v83_v56, %v339_v47 }
  0x10   :  { %v222_v5 = vsel %vm221_vm2, %v215_v0, %v195_v54  ;;  %v209_v6 = vsel %vm207_vm0, %v100_v52, %v160_v61  ;;  %v143_v7 = vmax.f32 %v55_v39, %v131_v57  ;;  %v36_v8 = vmax.f32 %v15_v58, %v260_v59 }
  0x11   :  { %v229_v12 = vsel %vm228_vm3, %v222_v5, %v147_v44  ;;  %v216_v13 = vsel %vm214_vm1, %v209_v6, %v178_v62  ;;  %v161_v14 = vrot.slane %v101_v2, 2  ;;  %v179_v15 = vrot.slane %v125_v3, 4 }
  0x12   :  { %v236_v16 = vsel %vm235_vm4, %v229_v12, %v111_v28  ;;  %v223_v17 = vsel %vm221_vm2, %v216_v13, %v196_v1  ;;  %v149_v18 = vmax.f32 %v143_v7, %v339_v47  ;;  %v56_v19 = vmax.f32 %v35_v63, %v269_v4 }
  0x13   :  { %243 = vst.msk [vmem:[%s441_s1] sm:$0x3f] %vm242_vm5, %v236_v16  ;;  %v230_v22 = vsel %vm228_vm3, %v223_v17, %v148_v55  ;;  %v210_v23 = vsel %vm207_vm0, %v101_v2, %v161_v14  ;;  %v57_v24 = vmax.f32 %v36_v8, %v270_v9  ;;  %v37_v25 = vmax.f32 %v16_v10, %v261_v11 }
  0x14   :  { %v237_v28 = vsel %vm235_vm4, %v230_v22, %v112_v37  ;;  %v197_v29 = vrot.slane %v149_v18, 6  ;;  %v217_v30 = vsel %vm214_vm1, %v210_v23, %v179_v15  ;;  %v72_v31 = vrot.slane %v56_v19, 1 }
  0x15   :  { %244 = vst.msk [vmem:[%s441_s1 + $0x8] sm:$0x3f] %vm242_vm5, %v237_v28  ;;  %v90_v33 = vrot.slane %v56_v19, 2  ;;  %v114_v34 = vrot.slane %v57_v24, 2  ;;  %v132_v35 = vrot.slane %v57_v24, 1  ;;  %v38_v36 = vmax.f32 %v17_v20, %v262_v21 }
  0x16   :  { %v224_v38 = vsel %vm221_vm2, %v217_v30, %v197_v29  ;;  %v84_v37 = vmax.f32 %v56_v19, %v72_v31  ;;  %v58_v39 = vmax.f32 %v37_v25, %v271_v26  ;;  %v74_v40 = vrot.slane %v273_v27, 1 }
  0x17   :  { %v231_v41 = vsel %vm228_vm3, %v224_v38, %v149_v18  ;;  %v144_v42 = vmax.f32 %v57_v24, %v132_v35  ;;  %v59_v43 = vmax.f32 %v38_v36, %v272_v32  ;;  %v92_v44 = vrot.slane %v273_v27, 2 }
  0x18   :  { %v238_v45 = vsel %vm235_vm4, %v231_v41, %v339_v47  ;;  %v102_v46 = vmax.f32 %v84_v37, %v90_v33  ;;  %v126_v48 = vmax.f32 %v84_v37, %v114_v34  ;;  %v73_v49 = vrot.slane %v58_v39, 1 }
  0x19   :  { %245 = vst.msk [vmem:[%s441_s1 + $0x10] sm:$0x3f] %vm242_vm5, %v238_v45  ;;  %v150_v51 = vmax.f32 %v144_v42, %v114_v34  ;;  %v91_v52 = vrot.slane %v58_v39, 2  ;;  %v115_v53 = vrot.slane %v59_v43, 2  ;;  %v133_v54 = vrot.slane %v59_v43, 1 }
  0x1a   :  { %v162_v55 = vrot.slane %v102_v46, 2  ;;  %v180_v56 = vrot.slane %v126_v48, 4  ;;  %v85_v57 = vmax.f32 %v58_v39, %v73_v49  ;;  %v86_v47 = vmax.f32 %v273_v27, %v74_v40 }
  0x1b   :  { %v198_v58 = vrot.slane %v150_v51, 6  ;;  %v145_v59 = vmax.f32 %v59_v43, %v133_v54  ;;  %v116_v60 = vrot.slane %v274_v50, 2  ;;  %v134_v61 = vrot.slane %v274_v50, 1 }
  0x1c   :  { %v211_v62 = vsel %vm207_vm0, %v102_v46, %v162_v55  ;;  %v103_v63 = vmax.f32 %v85_v57, %v91_v52  ;;  %v127_v0 = vmax.f32 %v85_v57, %v115_v53  ;;  %v104_v1 = vmax.f32 %v86_v47, %v92_v44 }
  0x1d   :  { %v218_v2 = vsel %vm214_vm1, %v211_v62, %v180_v56  ;;  %v151_v3 = vmax.f32 %v145_v59, %v115_v53  ;;  %v128_v4 = vmax.f32 %v86_v47, %v116_v60  ;;  %v146_v5 = vmax.f32 %v274_v50, %v134_v61 }
  0x1e   :  { %v225_v6 = vsel %vm221_vm2, %v218_v2, %v198_v58  ;;  %v163_v7 = vrot.slane %v103_v63, 2  ;;  %v181_v8 = vrot.slane %v127_v0, 4  ;;  %v164_v9 = vrot.slane %v104_v1, 2 }
  0x1f   :  { %v232_v10 = vsel %vm228_vm3, %v225_v6, %v150_v51  ;;  %v199_v11 = vrot.slane %v151_v3, 6  ;;  %v152_v12 = vmax.f32 %v146_v5, %v116_v60  ;;  %v182_v13 = vrot.slane %v128_v4, 4 }
  0x20   :  { %v239_v14 = vsel %vm235_vm4, %v232_v10, %v114_v34  ;;  %v212_v15 = vsel %vm207_vm0, %v103_v63, %v163_v7  ;;  %v213_v16 = vsel %vm207_vm0, %v104_v1, %v164_v9 }
  0x21   :  { %246 = vst.msk [vmem:[%s441_s1 + $0x18] sm:$0x3f] %vm242_vm5, %v239_v14  ;;  %v219_v17 = vsel %vm214_vm1, %v212_v15, %v181_v8  ;;  %v200_v18 = vrot.slane %v152_v12, 6  ;;  %v220_v19 = vsel %vm214_vm1, %v213_v16, %v182_v13 }
  0x22   :  { %v226_v20 = vsel %vm221_vm2, %v219_v17, %v199_v11 }
  0x23   :  { %v233_v21 = vsel %vm228_vm3, %v226_v20, %v151_v3  ;;  %v227_v22 = vsel %vm221_vm2, %v220_v19, %v200_v18 }
  0x24   :  { %v240_v23 = vsel %vm235_vm4, %v233_v21, %v115_v53  ;;  %v234_v24 = vsel %vm228_vm3, %v227_v22, %v152_v12 }
  0x25   :  { %247 = vst.msk [vmem:[%s441_s1 + $0x20] sm:$0x3f] %vm242_vm5, %v240_v23  ;;  %v241_v25 = vsel %vm235_vm4, %v234_v24, %v116_v60 }
  0x26   :  { %248 = vst.msk [vmem:[%s441_s1 + $0x28] sm:$0x3f] %vm242_vm5, %v241_v25 }

</bundles_post_ra>
